<compile_context>
chip_gen: v6e
topology: v6e:2x2x1
jax: 0.10.0
libtpu: 0.0.40
codegen_flags: <defaults>
</compile_context>

<pallas_src>
import math

import jax
import jax.numpy as jnp
from jax.experimental import pallas as pl
from jax.experimental.pallas import tpu as pltpu


def _attn_kernel(x_ref, wqkv_ref, bqkv_ref, wo_ref, bo_ref, o_ref):
    bb, S, E = x_ref.shape
    x2 = x_ref[...].reshape(bb * S, E)                       # bf16 MXU operand

    # Fused QKV projection: one (bb*S, E) x (E, 3E) MXU issue, f32 accumulation.
    # 1/sqrt(E) is already folded into the Q columns of wqkv/bqkv wrapper-side.
    qkv = jnp.dot(x2, wqkv_ref[...],
                  preferred_element_type=jnp.float32) + bqkv_ref[...]

    # Static intra-vreg lane slices (cheap vs. three separate matmul launches at E=32).
    q = qkv[:, 0:E].reshape(bb, S, E)
    k = qkv[:, E:2 * E].reshape(bb, S, E)
    v = qkv[:, 2 * E:3 * E].reshape(bb, S, E)

    scores = jnp.einsum('bqd,bkd->bqk',
                        q.astype(jnp.bfloat16), k.astype(jnp.bfloat16),
                        preferred_element_type=jnp.float32)

    # Softmax kept in f32 on VPU/EUP (v5e has no bf16 VPU/EUP).
    m = jnp.max(scores, axis=-1, keepdims=True)
    p = jnp.exp(scores - m)
    denom = jnp.sum(p, axis=-1, keepdims=True)
    attn = p * pl.reciprocal(denom, approx=True)             # EUP reciprocal + VPU mul

    ctx = jnp.einsum('bqk,bkd->bqd',
                     attn.astype(jnp.bfloat16), v.astype(jnp.bfloat16),
                     preferred_element_type=jnp.float32)

    out = jnp.dot(ctx.reshape(bb * S, E).astype(jnp.bfloat16), wo_ref[...],
                  preferred_element_type=jnp.float32) + bo_ref[...]

    # One contiguous block store for the whole (bb, S, E) tile.
    o_ref[...] = out.reshape(bb, S, E).astype(o_ref.dtype)


def _is_multi_core_tpu():
    """True on chips with 2 TensorCores (v7x)."""
    try:
        return "v7" in jax.devices()[0].device_kind.lower()
    except Exception:
        return False


def _choose_batch_block(B, S, E, multi_core):
    """Batch-block size: fit VMEM, and only split across v7x cores if work amortizes."""
    # Conservative live-bytes-per-batch estimate (intermediates + double-buffered I/O).
    per_batch = (4 * S * 3 * E            # qkv f32
                 + 3 * 2 * S * E          # q/k/v bf16
                 + 4 * S * S + 2 * S * S  # scores f32 + attn bf16
                 + 4 * S * E              # ctx f32
                 + 2 * 2 * S * E          # x block bf16, double-buffered
                 + 2 * 4 * S * E)         # out block f32, double-buffered
    budget = 24 * 1024 * 1024             # headroom vs. v7x 64 MiB physical VMEM
    bb = max(1, min(B, budget // max(per_batch, 1)))

    # v7x: shard batches across the 2 TensorCores only when per-core, per-step MACs
    # clearly amortize the ~600-cycle grid-step overhead. At tiny shapes this stays
    # collapsed (grid=(1,)) on every chip, which also keeps the code path reproducible.
    macs_per_batch = 4 * S * E * E + 2 * S * S * E
    if multi_core and B >= 2 and (B // 2) * macs_per_batch >= (1 << 22):
        bb = min(bb, max(1, B // 2))

    while B % bb != 0:                    # keep full blocks (no padded garbage batches)
        bb -= 1
    return bb


def self_attention_v3(x, w_qkv, b_qkv, w_out, b_out, *, batch_block=None):
    """x: (B, S, E) float32. Weights laid out as y = x @ W + b (torch-transposed)."""
    B, S, E = x.shape
    scale = 1.0 / math.sqrt(E)

    # Fold 1/sqrt(E) into the Q columns of the fused QKV weight/bias (one-time,
    # wrapper-side XLA ops) and cast the MXU weight operands + x to bf16.
    col_scale = jnp.concatenate(
        [jnp.full((1, E), scale, jnp.float32), jnp.ones((1, 2 * E), jnp.float32)],
        axis=1)
    w_qkv_s = (w_qkv * col_scale).astype(jnp.bfloat16)
    b_qkv_s = b_qkv.reshape(1, 3 * E) * col_scale            # biases stay f32
    w_out_b = w_out.astype(jnp.bfloat16)
    b_out_f = b_out.reshape(1, E).astype(jnp.float32)
    x_b = x.astype(jnp.bfloat16)

    if batch_block is None:
        batch_block = _choose_batch_block(B, S, E, _is_multi_core_tpu())
    bb = batch_block
    assert B % bb == 0, "batch_block must divide the batch dimension"

    return pl.pallas_call(
        _attn_kernel,
        out_shape=jax.ShapeDtypeStruct((B, S, E), x.dtype),
        grid_spec=pltpu.PrefetchScalarGridSpec(
            num_scalar_prefetch=0,
            grid=(B // bb,),
            in_specs=[
                pl.BlockSpec((bb, S, E), lambda i: (i, 0, 0)),   # x (bf16)
                pl.BlockSpec((E, 3 * E), lambda i: (0, 0)),      # fused QKV weight (bf16)
                pl.BlockSpec((1, 3 * E), lambda i: (0, 0)),      # fused QKV bias (f32)
                pl.BlockSpec((E, E), lambda i: (0, 0)),          # output weight (bf16)
                pl.BlockSpec((1, E), lambda i: (0, 0)),          # output bias (f32)
            ],
            out_specs=pl.BlockSpec((bb, S, E), lambda i: (i, 0, 0)),
        ),
        compiler_params=pltpu.CompilerParams(
            dimension_semantics=("parallel",),
            vmem_limit_bytes=32 * 1024 * 1024),
    )(x_b, w_qkv_s, b_qkv_s, w_out_b, b_out_f)


def self_attention_v3_ref(x, w_qkv, b_qkv, w_out, b_out):
    """Pure-JAX f32 reference matching the PyTorch forward."""
    E = x.shape[-1]
    qkv = x @ w_qkv + b_qkv.reshape(-1)
    q, k, v = jnp.split(qkv, 3, axis=-1)
    scores = q @ jnp.swapaxes(k, -1, -2) / math.sqrt(E)
    attn = jax.nn.softmax(scores, axis=-1)
    ctx = attn @ v
    return ctx @ w_out + b_out.reshape(-1)


if __name__ == "__main__":
    B, S, E = 2, 8, 32

    key = jax.random.PRNGKey(0)
    kx, k1, k2, k3, k4 = jax.random.split(key, 5)

    x = jax.random.uniform(kx, (B, S, E), dtype=jnp.float32)

    # Deterministic nn.Linear-style init (uniform in +-1/sqrt(fan_in)).
    bound = 1.0 / math.sqrt(E)
    w_qkv = jax.random.uniform(k1, (E, 3 * E), minval=-bound, maxval=bound, dtype=jnp.float32)
    b_qkv = jax.random.uniform(k2, (1, 3 * E), minval=-bound, maxval=bound, dtype=jnp.float32)
    w_out = jax.random.uniform(k3, (E, E), minval=-bound, maxval=bound, dtype=jnp.float32)
    b_out = jax.random.uniform(k4, (1, E), minval=-bound, maxval=bound, dtype=jnp.float32)

    ref = self_attention_v3_ref(x, w_qkv, b_qkv, w_out, b_out)

    # Tolerance loosened vs. an exact-f32 comparison: bf16 MXU operands (~2^-9 relative
    # per cast) plus pl.reciprocal(approx=True) on the softmax denominator.
    tol = dict(atol=2e-2, rtol=2e-2)

    out = jax.block_until_ready(self_attention_v3(x, w_qkv, b_qkv, w_out, b_out))
    assert out.shape == (B, S, E)
    assert jnp.allclose(out, ref, **tol), "pallas kernel mismatch vs reference"

    # Exercise the explicit batch-blocked path too (valid on any TPU generation).
    out_bb = jax.block_until_ready(
        self_attention_v3(x, w_qkv, b_qkv, w_out, b_out, batch_block=1))
    assert jnp.allclose(out_bb, ref, **tol), "batch-blocked path mismatch vs reference"

    print("KERNEL_OK")
</pallas_src>

<mosaic_0001>
module attributes {stable_mosaic.version = 11 : i64} {
  func.func @_attn_kernel(%arg0: i32, %arg1: memref<2x8x32xbf16, #tpu.memory_space<vmem>>, %arg2: memref<32x96xbf16, #tpu.memory_space<vmem>>, %arg3: memref<1x96xf32, #tpu.memory_space<vmem>>, %arg4: memref<32x32xbf16, #tpu.memory_space<vmem>>, %arg5: memref<1x32xf32, #tpu.memory_space<vmem>>, %arg6: memref<2x8x32xf32, #tpu.memory_space<vmem>>) attributes {dimension_semantics = [#tpu.dimension_semantics<parallel>], iteration_bounds = array<i64: 1>, scalar_prefetch = 0 : i64, scratch_operands = 0 : i64, tpu.core_type = #tpu.core_type<tc>, window_params = [{transform_indices = @transform_0, window_bounds = array<i64: 2, 8, 32>}, {pipeline_mode = #tpu.pipeline_mode<synchronous>, transform_indices = @transform_1, window_bounds = array<i64: 32, 96>}, {pipeline_mode = #tpu.pipeline_mode<synchronous>, transform_indices = @transform_2, window_bounds = array<i64: 1, 96>}, {pipeline_mode = #tpu.pipeline_mode<synchronous>, transform_indices = @transform_3, window_bounds = array<i64: 32, 32>}, {pipeline_mode = #tpu.pipeline_mode<synchronous>, transform_indices = @transform_4, window_bounds = array<i64: 1, 32>}, {transform_indices = @transform_5, window_bounds = array<i64: 2, 8, 32>}]} {
    %c0 = arith.constant 0 : index
    %c0_0 = arith.constant 0 : index
    %c0_1 = arith.constant 0 : index
    %0 = vector.load %arg1[%c0, %c0_0, %c0_1] : memref<2x8x32xbf16, #tpu.memory_space<vmem>>, vector<2x8x32xbf16>
    %1 = vector.shape_cast %0 : vector<2x8x32xbf16> to vector<16x32xbf16>
    %c0_2 = arith.constant 0 : index
    %c0_3 = arith.constant 0 : index
    %2 = vector.load %arg2[%c0_2, %c0_3] : memref<32x96xbf16, #tpu.memory_space<vmem>>, vector<32x96xbf16>
    %cst = arith.constant dense<0.000000e+00> : vector<16x96xf32>
    %3 = tpu.matmul %1, %2, %cst {dimension_numbers = #tpu.dot_dimension_numbers<[1], [0], [0], [1], [0, 0, 1, 1], [], []>} : vector<16x32xbf16>, vector<32x96xbf16>, vector<16x96xf32> -> vector<16x96xf32>
    %c0_4 = arith.constant 0 : index
    %c0_5 = arith.constant 0 : index
    %4 = vector.load %arg3[%c0_4, %c0_5] : memref<1x96xf32, #tpu.memory_space<vmem>>, vector<1x96xf32>
    %5 = vector.broadcast %4 : vector<1x96xf32> to vector<16x96xf32>
    %6 = arith.addf %3, %5 : vector<16x96xf32>
    %7 = vector.extract_strided_slice %6 {offsets = [0, 0], sizes = [16, 32], strides = [1, 1]} : vector<16x96xf32> to vector<16x32xf32>
    %8 = vector.shape_cast %7 : vector<16x32xf32> to vector<2x8x32xf32>
    %9 = vector.extract_strided_slice %6 {offsets = [0, 32], sizes = [16, 32], strides = [1, 1]} : vector<16x96xf32> to vector<16x32xf32>
    %10 = vector.shape_cast %9 : vector<16x32xf32> to vector<2x8x32xf32>
    %11 = vector.extract_strided_slice %6 {offsets = [0, 64], sizes = [16, 32], strides = [1, 1]} : vector<16x96xf32> to vector<16x32xf32>
    %12 = vector.shape_cast %11 : vector<16x32xf32> to vector<2x8x32xf32>
    %13 = arith.truncf %8 : vector<2x8x32xf32> to vector<2x8x32xbf16>
    %14 = arith.truncf %10 : vector<2x8x32xf32> to vector<2x8x32xbf16>
    "tpu.trace_start"() <{level = 10 : i32, message = "bqd,bkd->bqk"}> : () -> ()
    %cst_6 = arith.constant dense<0.000000e+00> : vector<2x8x8xf32>
    %15 = tpu.matmul %13, %14, %cst_6 {dimension_numbers = #tpu.dot_dimension_numbers<[2], [2], [1], [1], [0, 0, 0, 1, 1, 1], [0], [0]>} : vector<2x8x32xbf16>, vector<2x8x32xbf16>, vector<2x8x8xf32> -> vector<2x8x8xf32>
    "tpu.trace_stop"() : () -> ()
    %cst_7 = arith.constant dense<0xFF800000> : vector<2x8xf32>
    %16 = vector.multi_reduction <maximumf>, %15, %cst_7 [2] : vector<2x8x8xf32> to vector<2x8xf32>
    %17 = vector.shape_cast %16 : vector<2x8xf32> to vector<2x8x1xf32>
    %18 = vector.broadcast %17 : vector<2x8x1xf32> to vector<2x8x8xf32>
    %19 = arith.subf %15, %18 : vector<2x8x8xf32>
    %20 = math.exp %19 : vector<2x8x8xf32>
    %cst_8 = arith.constant dense<0.000000e+00> : vector<2x8xf32>
    %21 = vector.multi_reduction <add>, %20, %cst_8 [2] : vector<2x8x8xf32> to vector<2x8xf32>
    %22 = vector.shape_cast %21 : vector<2x8xf32> to vector<2x8x1xf32>
    %23 = tpu.reciprocal %22 {approx = true} : vector<2x8x1xf32> -> vector<2x8x1xf32>
    %24 = vector.broadcast %23 : vector<2x8x1xf32> to vector<2x8x8xf32>
    %25 = arith.mulf %20, %24 : vector<2x8x8xf32>
    %26 = arith.truncf %25 : vector<2x8x8xf32> to vector<2x8x8xbf16>
    %27 = arith.truncf %12 : vector<2x8x32xf32> to vector<2x8x32xbf16>
    "tpu.trace_start"() <{level = 10 : i32, message = "bqk,bkd->bqd"}> : () -> ()
    %cst_9 = arith.constant dense<0.000000e+00> : vector<2x8x32xf32>
    %28 = tpu.matmul %26, %27, %cst_9 {dimension_numbers = #tpu.dot_dimension_numbers<[2], [1], [1], [2], [0, 0, 0, 1, 1, 2], [0], [0]>} : vector<2x8x8xbf16>, vector<2x8x32xbf16>, vector<2x8x32xf32> -> vector<2x8x32xf32>
    "tpu.trace_stop"() : () -> ()
    %29 = vector.shape_cast %28 : vector<2x8x32xf32> to vector<16x32xf32>
    %30 = arith.truncf %29 : vector<16x32xf32> to vector<16x32xbf16>
    %c0_10 = arith.constant 0 : index
    %c0_11 = arith.constant 0 : index
    %31 = vector.load %arg4[%c0_10, %c0_11] : memref<32x32xbf16, #tpu.memory_space<vmem>>, vector<32x32xbf16>
    %cst_12 = arith.constant dense<0.000000e+00> : vector<16x32xf32>
    %32 = tpu.matmul %30, %31, %cst_12 {dimension_numbers = #tpu.dot_dimension_numbers<[1], [0], [0], [1], [0, 0, 1, 1], [], []>} : vector<16x32xbf16>, vector<32x32xbf16>, vector<16x32xf32> -> vector<16x32xf32>
    %c0_13 = arith.constant 0 : index
    %c0_14 = arith.constant 0 : index
    %33 = vector.load %arg5[%c0_13, %c0_14] : memref<1x32xf32, #tpu.memory_space<vmem>>, vector<1x32xf32>
    %34 = vector.broadcast %33 : vector<1x32xf32> to vector<16x32xf32>
    %35 = arith.addf %32, %34 : vector<16x32xf32>
    %36 = vector.shape_cast %35 : vector<16x32xf32> to vector<2x8x32xf32>
    %c0_15 = arith.constant 0 : index
    %c0_16 = arith.constant 0 : index
    %c0_17 = arith.constant 0 : index
    %37 = vector.load %arg6[%c0_15, %c0_16, %c0_17] : memref<2x8x32xf32, #tpu.memory_space<vmem>>, vector<2x8x32xf32>
    tpu.vector_store %arg6[%c0_15, %c0_16, %c0_17], %36 {strides = array<i32>} : memref<2x8x32xf32, #tpu.memory_space<vmem>>, vector<2x8x32xf32>,
    return
  }
  func.func @transform_0(%arg0: i32) -> (i32, i32, i32) {
    %c0_i32 = arith.constant 0 : i32
    %c0_i32_0 = arith.constant 0 : i32
    %c0_i32_1 = arith.constant 0 : i32
    return %arg0, %c0_i32, %c0_i32_0 : i32, i32, i32
  }
  func.func @transform_1(%arg0: i32) -> (i32, i32) {
    %c0_i32 = arith.constant 0 : i32
    %c0_i32_0 = arith.constant 0 : i32
    %c0_i32_1 = arith.constant 0 : i32
    return %c0_i32, %c0_i32_0 : i32, i32
  }
  func.func @transform_2(%arg0: i32) -> (i32, i32) {
    %c0_i32 = arith.constant 0 : i32
    %c0_i32_0 = arith.constant 0 : i32
    %c0_i32_1 = arith.constant 0 : i32
    return %c0_i32, %c0_i32_0 : i32, i32
  }
  func.func @transform_3(%arg0: i32) -> (i32, i32) {
    %c0_i32 = arith.constant 0 : i32
    %c0_i32_0 = arith.constant 0 : i32
    %c0_i32_1 = arith.constant 0 : i32
    return %c0_i32, %c0_i32_0 : i32, i32
  }
  func.func @transform_4(%arg0: i32) -> (i32, i32) {
    %c0_i32 = arith.constant 0 : i32
    %c0_i32_0 = arith.constant 0 : i32
    %c0_i32_1 = arith.constant 0 : i32
    return %c0_i32, %c0_i32_0 : i32, i32
  }
  func.func @transform_5(%arg0: i32) -> (i32, i32, i32) {
    %c0_i32 = arith.constant 0 : i32
    %c0_i32_0 = arith.constant 0 : i32
    %c0_i32_1 = arith.constant 0 : i32
    return %arg0, %c0_i32, %c0_i32_0 : i32, i32, i32
  }
}

</mosaic_0001>

<bundles_post_ra>
// kernel: tpu_custom_call.1
= control target key start
LH: loop header
LB: loop body
LE: loop exit
PB: predicated region body
PF: predicated region fallthrough
CT: control target
= control target key end

     0   :  { %10 = vsyncpa [#allocation3], 0  ;;  %s728_s0 = inlined_call_operand.hbm [shape: bf16[2,8,32], index: 0, kind: input, shape index: {}]   ;;  %s729_s1 = inlined_call_operand.hbm [shape: bf16[32,96], index: 1, kind: input, shape index: {}]   ;;  %s730_s2 = inlined_call_operand.vmem [shape: f32[1,96], index: 2, kind: input, shape index: {}]   ;;  %s731_s3 = inlined_call_operand.hbm [shape: bf16[32,32], index: 3, kind: input, shape index: {}]   ;;  %s732_s4 = inlined_call_operand.vmem [shape: f32[1,32], index: 4, kind: input, shape index: {}]   ;;  %s733_s5 = inlined_call_operand.hbm [shape: f32[2,8,32], index: 5, kind: output, shape index: {}]  }
   0x1   :  { %11 = vsyncpa [#allocation6], 0 }
   0x2   :  { %12 = vsyncpa [#allocation4], 0  ;;  %s625_s18 = smov [#allocation5]   ;;  %s626_s20 = smov [#allocation2]  }
   0x3   :  { %s30_s19 = sshll.u32 %s625_s18, 4  ;;  %s18_s21 = sshll.u32 %s626_s20, 4  ;;  %s31_s19 = int_to_ptr.vmem [resolvable:$true] %s30_s19  ;;  %s19_s21 = int_to_ptr.vmem [resolvable:$true] %s18_s21 }
   0x4   :  { %s547_s22 = scalar_lea.vmem %s31_s19, 256  ;;  %p552_p1 = scmp.lt.s32.totalorder %s31_s19, %s31_s19 }
   0x5   :  { %p548_p0 = scmp.ne.s32.totalorder %s31_s19, %s547_s22  ;;  %p553_p2 = scmp.lt.s32.totalorder %s547_s22, %s547_s22 }
   0x7   :  { %p554_p3 = por %p553_p2, %p552_p1 }
   0x9   :  { %p555_p4 = pnand %p554_p3, %p548_p0 }
   0xb   :  { %558 = shalt.err (!%p555_p4)
}
   0xc   :  { %s627_s23 = smov 64   ;;  %s628_s24 = smov 4  }
   0xd   :  { %36 = dma.hbm_to_vmem [thread:$0]  %s729_s1, 256, %s31_s19, [#allocation6], %s627_s23, %s627_s23, %s628_s24  }
   0xe   :  { %s567_s27 = scalar_lea.vmem %s19_s21, 128  ;;  %p572_p6 = scmp.lt.s32.totalorder %s19_s21, %s19_s21 }
   0xf   :  { %p568_p5 = scmp.ne.s32.totalorder %s19_s21, %s567_s27  ;;  %p573_p7 = scmp.lt.s32.totalorder %s567_s27, %s567_s27 }
  0x11   :  { %p574_p8 = por %p573_p7, %p572_p6 }
  0x13   :  { %p575_p9 = pnand %p574_p8, %p568_p5 }
  0x15   :  { %578 = shalt.err (!%p575_p9)
}
  0x16   :  { %24 = dma.hbm_to_vmem [thread:$0]  %s728_s0, 128, %s19_s21, [#allocation3], %s627_s23, %s627_s23, %s628_s24  }
  0x17   :  { %s629_s30 = smov [#allocation7]  }
  0x18   :  { %s44_s6 = sshll.u32 %s629_s30, 4  ;;  %s45_s6 = int_to_ptr.vmem [resolvable:$true] %s44_s6 }
  0x19   :  { %s587_s7 = scalar_lea.vmem %s45_s6, 256  ;;  %p592_p11 = scmp.lt.s32.totalorder %s45_s6, %s45_s6 }
  0x1a   :  { %p588_p10 = scmp.ne.s32.totalorder %s45_s6, %s587_s7  ;;  %p593_p12 = scmp.lt.s32.totalorder %s587_s7, %s587_s7 }
  0x1c   :  { %p594_p13 = por %p593_p12, %p592_p11 }
  0x1e   :  { %p595_p0 = pnand %p594_p13, %p588_p10 }
  0x20   :  { %598 = shalt.err (!%p595_p0)
}
  0x21   :  { %50 = dma.hbm_to_vmem [thread:$0]  %s731_s3, 256, %s45_s6, [#allocation6], %s627_s23, %s627_s23, %s628_s24  }
  0x22   :  { %619 = dma.done.wait [#allocation3], 128  }
  0x23   :  { %620 = vsyncadd [#allocation3], 4294967168 }
  0x24   :  { %621 = dma.done.wait [#allocation6], 512  }
  0x25   :  { %622 = vsyncadd [#allocation6], 4294966784  ;;  %v630_v0 = vmov 0.0   ;;  %vm631_vm0 = vmmov 0   ;;  %v526_v1 = vld [vmem:[#allocation5 + $0x8] sm:$0xff]   ;;  %v527_v2 = vld [vmem:[#allocation5] sm:$0xff]  }
  0x26   :  { %475 = vmatprep.subr.bf16.mxu0 %v630_v0  ;;  %479 = vmatprep.mubr.msk.bf16.mxu0 %vm631_vm0, %v630_v0  ;;  %v528_v3 = vld [vmem:[#allocation2] sm:$0xff]   ;;  %vm93_vm1 = vcmask 261120   ;;  %s632_s9 = smov 96   ;;  %vm238_vm2 = vcmask 64512   ;;  %vm268_vm3 = vcmask 1043456   ;;  %v530_v50 = vld [vmem:[#allocation7] sm:$0xff]  }
  0x27   :  { %483 = vmatprep.subr.bf16.mxu1 %v630_v0  ;;  %485 = vmatprep.mubr.msk.bf16.mxu1 %vm631_vm0, %v630_v0  ;;  %v448_v4 = vld [vmem:[%s730_s2] ss:$0 sm:$0xff]  ;;  %s633_s11 = smov [#allocation8]  }
  0x28   :  { %476 = vmatpush3.bf16.msra.mxu0 %v526_v1  ;;  %v529_v49 = vld [vmem:[#allocation7 + $0x8] sm:$0xff]   ;;  %s435_s12 = sshll.u32 %s633_s11, 4  ;;  %s436_s12 = int_to_ptr.vmem [resolvable:$true] %s435_s12 }
  0x29   :  { %477 = vmatprep.subr.bf16.mxu0 %v630_v0  ;;  %v457_v60 = vld [vmem:[%s732_s4] ss:$0 sm:$0xff]  ;;  %s599_s13 = scalar_lea.vmem %s436_s12, 256  ;;  %p604_p2 = scmp.lt.s32.totalorder %s436_s12, %s436_s12 }
  0x2a   :  { %p600_p1 = scmp.ne.s32.totalorder %s436_s12, %s599_s13  ;;  %p605_p3 = scmp.lt.s32.totalorder %s599_s13, %s599_s13 }
  0x2c   :  { %478 = vmatpush3.bf16.msra.mxu0 %v527_v2  ;;  %p606_p4 = por %p605_p3, %p604_p2 }
  0x2d   :  { %489 = vmatprep.subr.bf16.mxu0 %v630_v0 }
  0x2e   :  { %p607_p5 = pnand %p606_p4, %p600_p1 }
  0x2f   :  { %480 = vmatmul.mubr.msk.bf16.vlgmr.msra.gmra.mxu0 %vm93_vm1, %v528_v3 }
  0x30   :  { %491 = vmatprep.mubr.msk.bf16.mxu0 %vm631_vm0, %v630_v0 }
  0xef   :  { %v131_v5 = vpop.f32.mrf.mxu0 }
  0xf0   :  { %v132_v6 = vadd.f32 %v448_v4, %v131_v5 }
  0xf1   :  { %v481_v7 = vpop.f32.mrf.mxu0 }
  0xf2   :  { %v138_v8 = vpack.c.bf16 %v132_v6, %v132_v6 }
  0xf3   :  { %v134_v9 = vpop.f32.mrf.mxu0 }
  0xf4   :  { %v135_v10 = vadd.f32 %v448_v4, %v134_v9  ;;  %141 = vrot.lane.b32.xlu0 %v138_v8, %s632_s9 }
  0xf5   :  { %v482_v11 = vpop.f32.mrf.mxu0 }
  0xf6   :  { %v139_v12 = vpack.c.bf16 %v135_v10, %v135_v10 }
  0xf8   :  { %190 = vrot.lane.b32.xlu0 %v139_v12, %s632_s9 }
 0x166   :  { %v142_v13 = vpop.permute.xlu0 %141 }
 0x167   :  { %v147_v14 = vsel %vm93_vm1, %v142_v13, 0 }
 0x168   :  { %484 = vmatpush3.bf16.xpose.msra.mxu1 %v147_v14 }
 0x169   :  { %495 = vmatprep.subr.bf16.mxu1 %v630_v0 }
 0x16a   :  { %v191_v15 = vpop.permute.xlu0 %190 }
 0x16b   :  { %v196_v16 = vsel %vm93_vm1, %v191_v15, 0 }
 0x16c   :  { %490 = vmatpush3.bf16.xpose.msra.mxu0 %v196_v16 }
 0x16d   :  { %501 = vmatprep.subr.bf16.mxu0 %v630_v0 }
 0x16f   :  { %486 = vmatmul.mubr.msk.bf16.vlgmr.msra.gmra.mxu1 %vm93_vm1, %v138_v8 }
 0x170   :  { %497 = vmatprep.mubr.msk.bf16.mxu1 %vm631_vm0, %v630_v0 }
 0x173   :  { %492 = vmatmul.mubr.msk.bf16.vlgmr.msra.gmra.mxu0 %vm93_vm1, %v139_v12 }
 0x174   :  { %503 = vmatprep.mubr.msk.bf16.mxu0 %vm631_vm0, %v630_v0 }
 0x22f   :  { %v183_v17 = vpop.f32.mrf.mxu1 }
 0x230   :  { %v239_v18 = vsel %vm238_vm2, %v183_v17, -inf }
 0x231   :  { %240 = vmax.xlane.f32.xlu1 %v239_v18  ;;  %v487_v19 = vpop.f32.mrf.mxu1 }
 0x233   :  { %v186_v20 = vpop.f32.mrf.mxu1  ;;  %v232_v21 = vpop.f32.mrf.mxu0 }
 0x234   :  { %v242_v22 = vsel %vm238_vm2, %v232_v21, -inf }
 0x235   :  { %v488_v23 = vpop.f32.mrf.mxu1  ;;  %243 = vmax.xlane.f32.xlu1 %v242_v22  ;;  %v493_v24 = vpop.f32.mrf.mxu0 }
 0x237   :  { %v235_v25 = vpop.f32.mrf.mxu0 }
 0x239   :  { %v494_v26 = vpop.f32.mrf.mxu0 }
 0x246   :  { %263 = vrot.lane.b32.xlu1 %v138_v8, %s627_s23 }
 0x2ba   :  { %v241_v27 = vpop.xlane.xlu1 %240 }
 0x2bb   :  { %v245_v28 = vsub.f32 %v183_v17, %v241_v27 }
 0x2bd   :  { %v247_v29 = vmul.f32 1.442695, %v245_v28 }
 0x2be   :  { %v244_v30 = vpop.xlane.xlu1 %243 }
 0x2bf   :  { %531 = vpow2.f32 %v247_v29  ;;  %v246_v31 = vsub.f32 %v232_v21, %v244_v30 }
 0x2c1   :  { %v249_v32 = vmul.f32 1.442695, %v246_v31 }
 0x2c2   :  { %v264_v33 = vpop.permute.xlu1 %263 }
 0x2c3   :  { %533 = vpow2.f32 %v249_v32  ;;  %v270_v34 = vsel %vm268_vm3, %v264_v33, 0 }
 0x2c4   :  { %496 = vmatpush3.bf16.msra.mxu1 %v270_v34 }
 0x2c5   :  { %507 = vmatprep.subr.bf16.mxu1 %v630_v0 }
 0x2cc   :  { %v532_v35 = vpop.eup %531 }
 0x2cd   :  { %v251_v36 = vsel %vm238_vm2, %v532_v35, 0.0 }
 0x2ce   :  { %252 = vadd.xlane.f32.xlu0 %v251_v36 }
 0x2d0   :  { %v534_v37 = vpop.eup %533 }
 0x2d1   :  { %v254_v38 = vsel %vm238_vm2, %v534_v37, 0.0 }
 0x2d2   :  { %255 = vadd.xlane.f32.xlu1 %v254_v38 }
 0x2e3   :  { %312 = vrot.lane.b32.xlu1 %v139_v12, %s627_s23 }
 0x357   :  { %v253_v39 = vpop.xlane.xlu0 %252 }
 0x358   :  { %535 = vrcp.f32 %v253_v39 }
 0x35b   :  { %v256_v40 = vpop.xlane.xlu1 %255 }
 0x35c   :  { %537 = vrcp.f32 %v256_v40 }
 0x35f   :  { %v313_v41 = vpop.permute.xlu1 %312 }
 0x360   :  { %v318_v42 = vsel %vm268_vm3, %v313_v41, 0 }
 0x361   :  { %502 = vmatpush3.bf16.msra.mxu0 %v318_v42 }
 0x365   :  { %v536_v43 = vpop.eup %535 }
 0x366   :  { %v259_v44 = vmul.f32 %v536_v43, %v532_v35 }
 0x368   :  { %v261_v45 = vpack.c.bf16 %v259_v44, %v259_v44 }
 0x369   :  { %v538_v46 = vpop.eup %537 }
 0x36a   :  { %498 = vmatmul.mubr.msk.bf16.vlgmr.msra.gmra.mxu1 %vm238_vm2, %v261_v45  ;;  %v260_v47 = vmul.f32 %v538_v46, %v534_v37 }
 0x36b   :  { %511 = vmatprep.mubr.msk.bf16.mxu1 %vm631_vm0, %v630_v0  ;;  %508 = vmatpush3.bf16.msra.mxu1 %v529_v49 }
 0x36c   :  { %v262_v48 = vpack.c.bf16 %v260_v47, %v260_v47  ;;  %509 = vmatprep.subr.bf16.mxu1 %v630_v0 }
 0x36e   :  { %504 = vmatmul.mubr.msk.bf16.vlgmr.msra.gmra.mxu0 %vm238_vm2, %v262_v48 }
 0x36f   :  { %510 = vmatpush3.bf16.msra.mxu1 %v530_v50 }
 0x42a   :  { %v306_v51 = vpop.f32.mrf.mxu1 }
 0x42c   :  { %v499_v52 = vpop.f32.mrf.mxu1 }
 0x42e   :  { %v309_v53 = vpop.f32.mrf.mxu1  ;;  %v354_v54 = vpop.f32.mrf.mxu0 }
 0x42f   :  { %v360_v55 = vpack.c.bf16 %v354_v54, %v306_v51 }
 0x430   :  { %v500_v56 = vpop.f32.mrf.mxu1  ;;  %v505_v57 = vpop.f32.mrf.mxu0 }
 0x431   :  { %512 = vmatmul.mubr.msk.bf16.vlgmr.msra.gmra.mxu1 %vm93_vm1, %v360_v55 }
 0x432   :  { %v357_v58 = vpop.f32.mrf.mxu0 }
 0x434   :  { %v506_v59 = vpop.f32.mrf.mxu0 }
 0x4f1   :  { %v421_v61 = vpop.f32.mrf.mxu1 }
 0x4f2   :  { %v422_v62 = vadd.f32 %v457_v60, %v421_v61 }
 0x4f3   :  { %v513_v63 = vpop.f32.mrf.mxu1 }
 0x4f4   :  { %428 = vst.msk [vmem:[#allocation8] sm:$0xff] %vm93_vm1, %v422_v62 }
 0x4f5   :  { %v424_v0 = vpop.f32.mrf.mxu1 }
 0x4f6   :  { %v425_v1 = vadd.f32 %v457_v60, %v424_v0 }
 0x4f7   :  { %v514_v2 = vpop.f32.mrf.mxu1 }
 0x4f8   :  { %429 = vst.msk [vmem:[#allocation8 + $0x8] sm:$0xff] %vm93_vm1, %v425_v1 }
 0x4f9   :  { %610 = shalt.err (!%p607_p5)
}
 0x4fa   :  { %s634_s4 = smov 128   ;;  %s635_s14 = smov 8  }
 0x4fb   :  { %441 = dma.vmem_to_hbm [thread:$0]  %s436_s12, 256, %s733_s5, [#allocation4], %s634_s4, %s634_s4, %s635_s14  }
 0x4fc   :  { %623 = dma.done.wait [#allocation4], 256  }
 0x4fd   :  { %624 = vsyncadd [#allocation4], 4294967040 }
 0x4fe   :  { %445 = vsyncpa [#allocation3], 1 }
 0x4ff   :  { %446 = vsyncpa [#allocation6], 1 }
 0x500   :  { %447 = vsyncpa [#allocation4], 1 }

</bundles_post_ra>
